<compile_context>
chip_gen: v7x
topology: tpu7x:2x2x1
jax: 0.10.0
libtpu: 0.0.40
codegen_flags: <defaults>
</compile_context>

<pallas_src>
import functools

import jax
import jax.numpy as jnp
from jax.experimental import pallas as pl
from jax.experimental.pallas import tpu as pltpu

LANES = 128
SUBLANES = 8
ACC_ROWS = 4 * SUBLANES       # 4 interleaved (8,128) partial accumulators
MAX_BLOCK_ROWS = 8192         # 8192 x 128 f32 = 4 MiB per input block
NUM_CORE_SPLITS = 2           # leading 'parallel' axis -> both TensorCores on v7x
# TODO(synk): profile on v7x to confirm the size-2 'parallel' axis shards across
# both TensorCores; if Mosaic serializes it, switch that axis to CORE_PARALLEL.


def _stable_bce(x, y):
    # Numerically stable BCE-with-logits: max(x,0) - x*y + log1p(exp(-|x|)).
    # Cast to f32 here so the kernel streams the native (possibly bf16) dtype
    # from HBM and converts on the VPU.
    x = x.astype(jnp.float32)
    y = y.astype(jnp.float32)
    return jnp.maximum(x, 0.0) - x * y + jnp.log1p(jnp.exp(-jnp.abs(x)))


def _bce_partial_sum_kernel(x_ref, y_ref, o_ref, acc_ref, *,
                            n_rows, block_rows, blocks_per_split, acc_rows):
    c = pl.program_id(0)           # core-split index ('parallel')
    j = pl.program_id(1)           # row-block index within split ('arbitrary')

    @pl.when(j == 0)
    def _init():
        acc_ref[...] = jnp.zeros_like(acc_ref)

    block_start = (c * blocks_per_split + j) * block_rows  # logical first row

    def accumulate(loss_f32):
        # Sublane-aligned partial reduction (block_rows,128) -> (acc_rows,128):
        # pure VPU adds, no per-step cross-lane (XLU) reduce, no masked partial
        # stores.  acc_rows = 32 when possible -> 4x shorter carried add chain.
        acc_ref[...] += loss_f32.reshape(
            block_rows // acc_rows, acc_rows, LANES).sum(axis=0)

    is_full = block_start + block_rows <= n_rows

    @pl.when(is_full)
    def _full_block():
        # Fast path: no iotas, no compares, no selects.
        accumulate(_stable_bce(x_ref[...], y_ref[...]))

    @pl.when(jnp.logical_not(is_full))
    def _partial_block():
        # Only the (at most one) ragged / phantom block per split pays for
        # masking.  Mask inputs first so undefined data in the padded tail of
        # the edge block (possibly NaN/Inf) cannot poison the sum.  The
        # validity broadcast is computed once and reused (JAX does not CSE
        # broadcast_in_dim).
        row_ids = block_start + jax.lax.broadcasted_iota(
            jnp.int32, (block_rows, 1), 0)
        valid = jnp.broadcast_to(row_ids < n_rows, (block_rows, LANES))
        x = jnp.where(valid, x_ref[...].astype(jnp.float32), 0.0)
        y = jnp.where(valid, y_ref[...].astype(jnp.float32), 0.0)
        accumulate(jnp.where(valid, _stable_bce(x, y), 0.0))

    @pl.when(j == pl.num_programs(1) - 1)
    def _flush():
        o_ref[...] = acc_ref[...]


def bce_logits_loss(output, target):
    """Equivalent of nn.BCEWithLogitsLoss()(output, target) (mean reduction)."""
    assert output.shape == target.shape
    n = int(output.size)
    assert n > 0

    x_flat = jnp.ravel(output)      # native dtype, no upcast copy
    y_flat = jnp.ravel(target)

    n_rows = n // LANES
    n_main = n_rows * LANES
    tail = n - n_main

    total = jnp.float32(0.0)

    if tail:
        # <128-element ragged tail: negligible, handled in plain JAX.
        total = total + jnp.sum(_stable_bce(x_flat[n_main:], y_flat[n_main:]))

    if n_rows > 0:
        xm = x_flat if tail == 0 else x_flat[:n_main]
        ym = y_flat if tail == 0 else y_flat[:n_main]
        x = xm.reshape(n_rows, LANES)   # free reshape of the contiguous prefix
        y = ym.reshape(n_rows, LANES)

        block_rows = min(MAX_BLOCK_ROWS,
                         ((n_rows + SUBLANES - 1) // SUBLANES) * SUBLANES)
        # Use the 4-way-interleaved accumulator only when the block is a
        # multiple of 32 rows (always true for large inputs).
        acc_rows = ACC_ROWS if block_rows % ACC_ROWS == 0 else SUBLANES
        n_blocks = pl.cdiv(n_rows, block_rows)
        blocks_per_split = pl.cdiv(n_blocks, NUM_CORE_SPLITS)

        itemsize = jnp.dtype(x.dtype).itemsize
        block_bytes = block_rows * LANES * itemsize
        # 2 inputs x 2 pipeline buffers x block, plus headroom; clamp to
        # [16 MiB, 48 MiB] so it is raised above v5e's 16 MiB default but never
        # exceeds v7x's 64 MiB physical VMEM.
        vmem_limit = int(min(48 << 20, max(16 << 20, 4 * block_bytes + (8 << 20))))

        def in_map(c, j):
            # Clamp the phantom step (when a split has no real blocks) to a
            # valid block; its logical row range is >= n_rows so the kernel
            # masks its contribution to zero.
            return (jnp.minimum(c * blocks_per_split + j, n_blocks - 1), 0)

        partials = pl.pallas_call(
            functools.partial(
                _bce_partial_sum_kernel,
                n_rows=n_rows,
                block_rows=block_rows,
                blocks_per_split=blocks_per_split,
                acc_rows=acc_rows),
            out_shape=jax.ShapeDtypeStruct(
                (NUM_CORE_SPLITS, acc_rows, LANES), jnp.float32),
            grid_spec=pltpu.PrefetchScalarGridSpec(
                num_scalar_prefetch=0,
                grid=(NUM_CORE_SPLITS, blocks_per_split),
                in_specs=[
                    pl.BlockSpec((block_rows, LANES), in_map),
                    pl.BlockSpec((block_rows, LANES), in_map),
                ],
                out_specs=pl.BlockSpec((None, acc_rows, LANES),
                                       lambda c, j: (c, 0, 0)),
                scratch_shapes=[pltpu.VMEM((acc_rows, LANES), jnp.float32)],
            ),
            compiler_params=pltpu.CompilerParams(
                dimension_semantics=("parallel", "arbitrary"),
                vmem_limit_bytes=vmem_limit),
            cost_estimate=pl.CostEstimate(
                flops=6 * n_main,
                transcendentals=2 * n_main,
                bytes_accessed=2 * n_main * itemsize
                + NUM_CORE_SPLITS * acc_rows * LANES * 4),
        )(x, y)
        total = total + jnp.sum(partials)

    return total / jnp.float32(n)


def _ref_loss(output, target):
    x = output.astype(jnp.float32)
    y = target.astype(jnp.float32)
    return jnp.mean(jnp.maximum(x, 0.0) - x * y + jnp.log1p(jnp.exp(-jnp.abs(x))))


if __name__ == "__main__":
    key = jax.random.PRNGKey(0)
    k1, k2, k3, k4, k5, k6 = jax.random.split(key, 6)

    # Main case: segmentation-style NCHW logits + binary targets.
    shape = (2, 4, 16, 16)
    logits = jax.random.normal(k1, shape, dtype=jnp.float32)
    targets = (jax.random.uniform(k2, shape) > 0.5).astype(jnp.float32)
    loss = bce_logits_loss(logits, targets)
    jax.block_until_ready(loss)
    assert jnp.allclose(loss, _ref_loss(logits, targets),
                        atol=1e-5, rtol=1e-5), (loss, _ref_loss(logits, targets))

    # Native-bf16 case: kernel streams bf16 and upcasts on the VPU.
    loss_bf16 = bce_logits_loss(logits.astype(jnp.bfloat16),
                                targets.astype(jnp.bfloat16))
    jax.block_until_ready(loss_bf16)
    ref_bf16 = _ref_loss(logits.astype(jnp.bfloat16), targets.astype(jnp.bfloat16))
    assert jnp.allclose(loss_bf16, ref_bf16, atol=1e-5, rtol=1e-5), (loss_bf16, ref_bf16)

    # Lane-unaligned case: 650 elements = 5 aligned rows + a 10-element tail.
    shape2 = (5, 130)
    l2 = jax.random.normal(k3, shape2, dtype=jnp.float32)
    t2 = (jax.random.uniform(k4, shape2) > 0.5).astype(jnp.float32)
    loss2 = bce_logits_loss(l2, t2)
    jax.block_until_ready(loss2)
    assert jnp.allclose(loss2, _ref_loss(l2, t2), atol=1e-5, rtol=1e-5), (loss2, _ref_loss(l2, t2))

    # Tiny case (<128 elements): pure-JAX fallback path.
    shape3 = (3, 5, 7)
    l3 = jax.random.normal(k5, shape3, dtype=jnp.float32)
    t3 = (jax.random.uniform(k6, shape3) > 0.5).astype(jnp.float32)
    loss3 = bce_logits_loss(l3, t3)
    jax.block_until_ready(loss3)
    assert jnp.allclose(loss3, _ref_loss(l3, t3), atol=1e-5, rtol=1e-5), (loss3, _ref_loss(l3, t3))

    print("KERNEL_OK")
</pallas_src>

<mosaic_0001>
module attributes {stable_mosaic.version = 11 : i64} {
  func.func @_bce_partial_sum_kernel(%arg0: i32, %arg1: i32, %arg2: memref<16x128xf32, #tpu.memory_space<vmem>>, %arg3: memref<16x128xf32, #tpu.memory_space<vmem>>, %arg4: memref<1x8x128xf32, #tpu.memory_space<vmem>>, %arg5: memref<8x128xf32, #tpu.memory_space<vmem>>) attributes {dimension_semantics = [#tpu.dimension_semantics<parallel>, #tpu.dimension_semantics<arbitrary>], iteration_bounds = array<i64: 2, 1>, scalar_prefetch = 0 : i64, scratch_operands = 1 : i64, tpu.core_type = #tpu.core_type<tc>, window_params = [{transform_indices = @transform_0, window_bounds = array<i64: 16, 128>}, {transform_indices = @transform_1, window_bounds = array<i64: 16, 128>}, {transform_indices = @transform_2, window_bounds = array<i64: 1, 8, 128>}]} {
    %c0_i32 = arith.constant 0 : i32
    %0 = arith.cmpi eq, %arg1, %c0_i32 : i32
    %1 = arith.extui %0 : i1 to i32
    %c0_i32_0 = arith.constant 0 : i32
    %2 = arith.cmpi ne, %1, %c0_i32_0 : i32
    scf.if %2 {
      %cst = arith.constant 0.000000e+00 : f32
      %16 = vector.broadcast %cst : f32 to vector<8x128xf32>
      %c0 = arith.constant 0 : index
      %c0_7 = arith.constant 0 : index
      %17 = vector.load %arg5[%c0, %c0_7] : memref<8x128xf32, #tpu.memory_space<vmem>>, vector<8x128xf32>
      tpu.vector_store %arg5[%c0, %c0_7], %16 {strides = array<i32>} : memref<8x128xf32, #tpu.memory_space<vmem>>, vector<8x128xf32>,
    } else {
    }
    %c1_i32 = arith.constant 1 : i32
    %3 = arith.muli %arg0, %c1_i32 : i32
    %4 = arith.addi %3, %arg1 : i32
    %c16_i32 = arith.constant 16 : i32
    %5 = arith.muli %4, %c16_i32 : i32
    %c16_i32_1 = arith.constant 16 : i32
    %6 = arith.addi %5, %c16_i32_1 : i32
    %c16_i32_2 = arith.constant 16 : i32
    %7 = arith.cmpi sle, %6, %c16_i32_2 : i32
    %8 = arith.extui %7 : i1 to i32
    %c0_i32_3 = arith.constant 0 : i32
    %9 = arith.cmpi ne, %8, %c0_i32_3 : i32
    scf.if %9 {
      %c0 = arith.constant 0 : index
      %c0_7 = arith.constant 0 : index
      %16 = vector.load %arg2[%c0, %c0_7] : memref<16x128xf32, #tpu.memory_space<vmem>>, vector<16x128xf32>
      %c0_8 = arith.constant 0 : index
      %c0_9 = arith.constant 0 : index
      %17 = vector.load %arg3[%c0_8, %c0_9] : memref<16x128xf32, #tpu.memory_space<vmem>>, vector<16x128xf32>
      %cst = arith.constant 0.000000e+00 : f32
      %18 = vector.broadcast %cst : f32 to vector<16x128xf32>
      %19 = arith.maximumf %16, %18 : vector<16x128xf32>
      %20 = arith.mulf %16, %17 : vector<16x128xf32>
      %21 = arith.subf %19, %20 : vector<16x128xf32>
      %22 = math.absf %16 : vector<16x128xf32>
      %cst_10 = arith.constant 0.000000e+00 : f32
      %23 = vector.broadcast %cst_10 : f32 to vector<16x128xf32>
      %24 = arith.subf %23, %22 : vector<16x128xf32>
      %25 = math.exp %24 : vector<16x128xf32>
      %26 = math.log1p %25 : vector<16x128xf32>
      %27 = arith.addf %21, %26 : vector<16x128xf32>
      %c0_11 = arith.constant 0 : index
      %c0_12 = arith.constant 0 : index
      %28 = vector.load %arg5[%c0_11, %c0_12] : memref<8x128xf32, #tpu.memory_space<vmem>>, vector<8x128xf32>
      %29 = vector.shape_cast %27 : vector<16x128xf32> to vector<2x8x128xf32>
      %cst_13 = arith.constant dense<0.000000e+00> : vector<8x128xf32>
      %30 = vector.multi_reduction <add>, %29, %cst_13 [0] : vector<2x8x128xf32> to vector<8x128xf32>
      %31 = arith.addf %28, %30 : vector<8x128xf32>
      %c0_14 = arith.constant 0 : index
      %c0_15 = arith.constant 0 : index
      %32 = vector.load %arg5[%c0_14, %c0_15] : memref<8x128xf32, #tpu.memory_space<vmem>>, vector<8x128xf32>
      tpu.vector_store %arg5[%c0_14, %c0_15], %31 {strides = array<i32>} : memref<8x128xf32, #tpu.memory_space<vmem>>, vector<8x128xf32>,
    } else {
    }
    %true = arith.constant true
    %10 = arith.xori %7, %true : i1
    %11 = arith.extui %10 : i1 to i32
    %c0_i32_4 = arith.constant 0 : i32
    %12 = arith.cmpi ne, %11, %c0_i32_4 : i32
    scf.if %12 {
      %16 = tpu.iota {dimensions = array<i32: 0>} : vector<16x1xi32>
      %17 = vector.broadcast %5 : i32 to vector<16x1xi32>
      %18 = arith.addi %17, %16 : vector<16x1xi32>
      %c16_i32_7 = arith.constant 16 : i32
      %19 = vector.broadcast %c16_i32_7 : i32 to vector<16x1xi32>
      %20 = arith.cmpi slt, %18, %19 : vector<16x1xi32>
      %21 = vector.shape_cast %20 : vector<16x1xi1> to vector<16x1xi1>
      %22 = vector.broadcast %21 : vector<16x1xi1> to vector<16x128xi1>
      %c0 = arith.constant 0 : index
      %c0_8 = arith.constant 0 : index
      %23 = vector.load %arg2[%c0, %c0_8] : memref<16x128xf32, #tpu.memory_space<vmem>>, vector<16x128xf32>
      %cst = arith.constant 0.000000e+00 : f32
      %24 = vector.broadcast %cst : f32 to vector<16x128xf32>
      %25 = arith.select %22, %23, %24 : vector<16x128xi1>, vector<16x128xf32>
      %c0_9 = arith.constant 0 : index
      %c0_10 = arith.constant 0 : index
      %26 = vector.load %arg3[%c0_9, %c0_10] : memref<16x128xf32, #tpu.memory_space<vmem>>, vector<16x128xf32>
      %cst_11 = arith.constant 0.000000e+00 : f32
      %27 = vector.broadcast %cst_11 : f32 to vector<16x128xf32>
      %28 = arith.select %22, %26, %27 : vector<16x128xi1>, vector<16x128xf32>
      %cst_12 = arith.constant 0.000000e+00 : f32
      %29 = vector.broadcast %cst_12 : f32 to vector<16x128xf32>
      %30 = arith.maximumf %25, %29 : vector<16x128xf32>
      %31 = arith.mulf %25, %28 : vector<16x128xf32>
      %32 = arith.subf %30, %31 : vector<16x128xf32>
      %33 = math.absf %25 : vector<16x128xf32>
      %cst_13 = arith.constant 0.000000e+00 : f32
      %34 = vector.broadcast %cst_13 : f32 to vector<16x128xf32>
      %35 = arith.subf %34, %33 : vector<16x128xf32>
      %36 = math.exp %35 : vector<16x128xf32>
      %37 = math.log1p %36 : vector<16x128xf32>
      %38 = arith.addf %32, %37 : vector<16x128xf32>
      %cst_14 = arith.constant 0.000000e+00 : f32
      %39 = vector.broadcast %cst_14 : f32 to vector<16x128xf32>
      %40 = arith.select %22, %38, %39 : vector<16x128xi1>, vector<16x128xf32>
      %c0_15 = arith.constant 0 : index
      %c0_16 = arith.constant 0 : index
      %41 = vector.load %arg5[%c0_15, %c0_16] : memref<8x128xf32, #tpu.memory_space<vmem>>, vector<8x128xf32>
      %42 = vector.shape_cast %40 : vector<16x128xf32> to vector<2x8x128xf32>
      %cst_17 = arith.constant dense<0.000000e+00> : vector<8x128xf32>
      %43 = vector.multi_reduction <add>, %42, %cst_17 [0] : vector<2x8x128xf32> to vector<8x128xf32>
      %44 = arith.addf %41, %43 : vector<8x128xf32>
      %c0_18 = arith.constant 0 : index
      %c0_19 = arith.constant 0 : index
      %45 = vector.load %arg5[%c0_18, %c0_19] : memref<8x128xf32, #tpu.memory_space<vmem>>, vector<8x128xf32>
      tpu.vector_store %arg5[%c0_18, %c0_19], %44 {strides = array<i32>} : memref<8x128xf32, #tpu.memory_space<vmem>>, vector<8x128xf32>,
    } else {
    }
    %c0_i32_5 = arith.constant 0 : i32
    %13 = arith.cmpi eq, %arg1, %c0_i32_5 : i32
    %14 = arith.extui %13 : i1 to i32
    %c0_i32_6 = arith.constant 0 : i32
    %15 = arith.cmpi ne, %14, %c0_i32_6 : i32
    scf.if %15 {
      %c0 = arith.constant 0 : index
      %c0_7 = arith.constant 0 : index
      %16 = vector.load %arg5[%c0, %c0_7] : memref<8x128xf32, #tpu.memory_space<vmem>>, vector<8x128xf32>
      %c0_8 = arith.constant 0 : index
      %c0_9 = arith.constant 0 : index
      %c0_10 = arith.constant 0 : index
      %17 = vector.load %arg4[%c0_8, %c0_9, %c0_10] : memref<1x8x128xf32, #tpu.memory_space<vmem>>, vector<1x8x128xf32>
      %18 = vector.shape_cast %17 : vector<1x8x128xf32> to vector<8x128xf32>
      %19 = vector.shape_cast %16 : vector<8x128xf32> to vector<1x8x128xf32>
      tpu.vector_store %arg4[%c0_8, %c0_9, %c0_10], %19 {strides = array<i32>} : memref<1x8x128xf32, #tpu.memory_space<vmem>>, vector<1x8x128xf32>,
    } else {
    }
    return
  }
  func.func @transform_0(%arg0: i32, %arg1: i32) -> (i32, i32) {
    %c1_i32 = arith.constant 1 : i32
    %0 = arith.muli %arg0, %c1_i32 : i32
    %1 = arith.addi %0, %arg1 : i32
    %c0_i32 = arith.constant 0 : i32
    %2 = arith.minsi %1, %c0_i32 : i32
    %c0_i32_0 = arith.constant 0 : i32
    %c0_i32_1 = arith.constant 0 : i32
    return %2, %c0_i32_0 : i32, i32
  }
  func.func @transform_1(%arg0: i32, %arg1: i32) -> (i32, i32) {
    %c1_i32 = arith.constant 1 : i32
    %0 = arith.muli %arg0, %c1_i32 : i32
    %1 = arith.addi %0, %arg1 : i32
    %c0_i32 = arith.constant 0 : i32
    %2 = arith.minsi %1, %c0_i32 : i32
    %c0_i32_0 = arith.constant 0 : i32
    %c0_i32_1 = arith.constant 0 : i32
    return %2, %c0_i32_0 : i32, i32
  }
  func.func @transform_2(%arg0: i32, %arg1: i32) -> (i32, i32, i32) {
    %c0_i32 = arith.constant 0 : i32
    %c0_i32_0 = arith.constant 0 : i32
    %c0_i32_1 = arith.constant 0 : i32
    return %arg0, %c0_i32, %c0_i32_0 : i32, i32, i32
  }
}

</mosaic_0001>

<bundles_post_ra>
// kernel: tpu_custom_call.1
= control target key start
LH: loop header
LB: loop body
LE: loop exit
PB: predicated region body
PF: predicated region fallthrough
CT: control target
= control target key end

     0   :  { %7 = vsyncpa [#allocation4], 0  ;;  %s1036_s0 = inlined_call_operand.hbm [shape: f32[16,128], index: 0, kind: input, shape index: {}]   ;;  %s1037_s1 = inlined_call_operand.hbm [shape: f32[16,128], index: 1, kind: input, shape index: {}]   ;;  %s1038_s2 = inlined_call_operand.hbm [shape: f32[2,8,128], index: 2, kind: output, shape index: {}]  }
   0x1   :  { %9 = vsyncpa [#allocation4 + $0x1], 0 }
   0x2   :  { %10 = vsyncpa [#allocation7], 0 }
   0x3   :  { %12 = vsyncpa [#allocation7 + $0x1], 0 }
   0x4   :  { %13 = vsyncpa [#allocation5], 0 }
   0x5   :  { %15 = vsyncpa [#allocation5 + $0x1], 0  ;;  %s801_s9 = smov 0   ;;  %s803_s10 = smov 0  }
   0x6   :  { %s805_s11 = smov 0   ;;  %s807_s12 = smov 0  }
   0x7   :  { %s809_s13 = smov 0   ;;  %s811_s14 = smov 0  }
   0x8   :  { %s813_s15 = smov 0   ;;  %s815_s16 = smov 0  }
   0x9 LB: > { %s478_s17 = sadd.s32 4294967295, %s778_s16   ;;  %s479_s18 = sadd.s32 4294967294, %s778_s16   ;;  %s778_s16 = sphi %s815_s16, %s21_s16   ;;  %s774_s15 = sphi %s813_s15, %s1057_s15   ;;  %s770_s14 = sphi %s811_s14, %s1056_s14   ;;  %s766_s13 = sphi %s809_s13, %s1026_s13   ;;  %s762_s12 = sphi %s807_s12, %s1055_s12   ;;  %s758_s11 = sphi %s805_s11, %s1054_s11   ;;  %s754_s10 = sphi %s803_s10, %s1053_s10   ;;  %s750_s9 = sphi %s801_s9, %s1052_s9  }
   0xa   : > { %s33_s19 = sadd.s32 1, %s774_s15  ;;  %p747_p1 = scmp.ne.s32.totalorder %s766_s13, 0 }
   0xb   : > { %p35_p0 = scmp.ge.s32.totalorder %s33_s19, 2  ;;  %p54_p2 = scmp.eq.s32.totalorder %s778_s16, 0 }
   0xc   : > { %p59_p3 = scmp.ne.s32.totalorder %s766_s13, %s762_s12  ;;  %p60_p5 = scmp.eq.s32.totalorder %s478_s17, 0 }
   0xd   : > { %s1059_s19 = smov (%p35_p0, %s33_s19), 0  ;;  %p847_p4 = por %p747_p1, %p54_p2 }
   0xe   : > { %p851_p6 = por %p60_p5, %p59_p3  ;;  %s101_s22 = ssub.s32 %s774_s15, %s1059_s19 }
   0xf   : > { %p102_p7 = scmp.eq.s32.totalorder %s101_s22, 0  ;;  %s104_s23 = sadd.s32 1, %s758_s11 }
  0x10   : > { %s1042_s21 = scalar_select %p851_p6, 1, 0 }
  0x11   : > { %s859_s24 = scalar_select %p102_p7, %s758_s11, %s104_s23  }
  0x12   : > { %p114_p8 = scmp.ne.s32.totalorder %s758_s11, %s754_s10  ;;  %p115_p9 = scmp.eq.s32.totalorder %s478_s17, 1 }
  0x13   : > { %p120_p10 = scmp.ne.s32.totalorder %s754_s10, %s750_s9  ;;  %p121_p11 = scmp.eq.s32.totalorder %s479_s18, 1 }
  0x14   : > { %p865_p12 = por %p115_p9, %p114_p8  ;;  %p518_p1 = scmp.lt.s32.totalorder %s778_s16, 2 }
  0x15   : > { %p870_p0 = por %p121_p11, %p120_p10  ;;  %s780_s27 = smov [#allocation3]  }
  0x16   : > { %s1043_s25 = scalar_select %p865_p12, 1, 0 }
  0x17   : > { %s1044_s26 = scalar_select %p870_p0, 1, 0 }
  0x18   : > { %s155_s28 = sshll.u32 %s780_s27, 4  ;;  %p877_p2 = pnand %p518_p1, %p847_p4  ;;  %s156_s28 = int_to_ptr.vmem [resolvable:$true] %s155_s28 }
  0x19   : > { %s611_s4 = scalar_lea.hbm %s1036_s0, 256 }
  0x1a   : > { %p612_p3 = scmp.ne.s32.totalorder %s1036_s0, %s611_s4  ;;  %p613_p5 = pneg %p877_p2 }
  0x1b   : > { %p618_p8 = scmp.lt.u32.totalorder %s611_s4, %s611_s4  ;;  %p620_p9 = scmp.lt.u32.totalorder %s611_s4, %s1036_s0 }
  0x1c   : > { %p614_p7 = pnand %p613_p5, %p612_p3 }
  0x1d   : > { %p621_p10 = por %p620_p9, %p618_p8 }
  0x1e   : > { %p615_p4 = pneg %p614_p7 }
  0x20   : > { %p622_p11 = pnand %p621_p10, %p615_p4 }
  0x22   : > { %625 = shalt.err (!%p622_p11)
}
  0x23   : > { %s626_s12 = scalar_lea.vmem %s156_s28, 256  ;;  %s633_s17 = scalar_lea.vmem %s156_s28, 512 }
  0x24   : > { %p627_p1 = scmp.ne.s32.totalorder %s156_s28, %s626_s12  ;;  %p634_p12 = scmp.lt.s32.totalorder %s156_s28, %s156_s28 }
  0x25   : > { %p635_p6 = scmp.lt.s32.totalorder %s633_s17, %s626_s12 }
  0x26   : > { %p629_p13 = pnand %p627_p1, %p613_p5 }
  0x27   : > { %p636_p3 = por %p635_p6, %p634_p12 }
  0x28   : > { %p630_p0 = pneg %p629_p13 }
  0x2a   : > { %p637_p7 = pnand %p636_p3, %p630_p0 }
  0x2c   : > { %640 = shalt.err (!%p637_p7)
}
  0x2d   : > { %s781_s18 = smov 128   ;;  %s782_s20 = smov 8  }
  0x2e   : > { %510 = dma.hbm_to_vmem [thread:$0]  (!%p877_p2), %s1036_s0, 256, %s156_s28, [#allocation4], %s781_s18, %s781_s18, %s782_s20  }
  0x2f   : > { %p488_p13 = scmp.ge.s32.totalorder %s778_s16, 1  ;;  %p187_p4 = scmp.lt.s32.totalorder %s778_s16, 3 }
  0x30   : > { %s783_s30 = smov [#allocation6]   ;;  %s641_s6 = scalar_lea.hbm %s1037_s1, 256 }
  0x31   : > { %p908_p8 = pnand %p488_p13, %p187_p4  ;;  %s179_s3 = sshll.u32 %s783_s30, 4  ;;  %s180_s3 = int_to_ptr.vmem [resolvable:$true] %s179_s3 }
  0x32   : > { %p642_p6 = scmp.ne.s32.totalorder %s1037_s1, %s641_s6  ;;  %p648_p9 = scmp.lt.u32.totalorder %s641_s6, %s641_s6 }
  0x33   : > { %s1046_s27 = scalar_select %p908_p8, 1, 0 }
  0x34   : > { %p644_p12 = pnand %p642_p6, %p613_p5  ;;  %p650_p10 = scmp.lt.u32.totalorder %s641_s6, %s1037_s1 }
  0x36   : > { %p645_p0 = pneg %p644_p12  ;;  %p651_p11 = por %p650_p10, %p648_p9 }
  0x38   : > { %p652_p1 = pnand %p651_p11, %p645_p0 }
  0x3a   : > { %655 = shalt.err (!%p652_p1)
}
  0x3b   : > { %s656_s17 = scalar_lea.vmem %s180_s3, 256  ;;  %s663_s22 = scalar_lea.vmem %s180_s3, 512 }
  0x3c   : > { %p657_p3 = scmp.ne.s32.totalorder %s180_s3, %s656_s17  ;;  %p664_p4 = scmp.lt.s32.totalorder %s180_s3, %s180_s3 }
  0x3d   : > { %p665_p8 = scmp.lt.s32.totalorder %s663_s22, %s656_s17 }
  0x3e   : > { %p659_p7 = pnand %p657_p3, %p613_p5 }
  0x3f   : > { %p666_p6 = por %p665_p8, %p664_p4 }
  0x40   : > { %p660_p13 = pneg %p659_p7 }
  0x42   : > { %p667_p12 = pnand %p666_p6, %p660_p13 }
  0x44   : > { %670 = shalt.err (!%p667_p12)
}
  0x45   : > { %513 = dma.hbm_to_vmem [thread:$0]  (!%p877_p2), %s1037_s1, 256, %s180_s3, [#allocation7], %s781_s18, %s781_s18, %s782_s20  }
  0x46   : > { %p1047_p0 = scmp.ne.s32.totalorder %s1046_s27, 0 }
  0x47   : > { %s193_s4 = sand.u32 (!%p1047_p0), 1, %s766_s13   ;;  %p1048_p5 = scmp.ne.s32.totalorder (!%p1047_p0), %s1042_s21, 0 }
  0x48   : > { %191 = sbr.rel (%p1047_p0) target bundleno = 204 (0xcc), region = 28  ;;  %s489_s5 = sshll.u32 (!%p1047_p0), %s193_s4, 4 }
  0x49   : > { %s194_s6 = scalar_lea.sflag (!%p1047_p0), [#allocation4], %s193_s4  ;;  %s938_s7 = scalar_lea.vmem (!%p1047_p0), [#allocation3], %s489_s5 }
  0x4f   : > { %736 = dma.done.wait (%p1048_p5), %s194_s6, 256  }
  0x50   : > { %738 = vsyncadd (%p1048_p5), %s194_s6, 4294967040  ;;  %s203_s29 = scalar_lea.sflag [#allocation7], %s193_s4  ;;  %s944_s8 = scalar_lea.vmem [#allocation6], %s489_s5 }
  0x51   : > { %740 = dma.done.wait (%p1048_p5), %s203_s29, 256  }
  0x52   : > { %742 = vsyncadd (%p1048_p5), %s203_s29, 4294967040  ;;  %s229_s18 = sand.u32 1, %s754_s10   ;;  %s492_s20 = sshll.u32 %s770_s14, 4  ;;  %v784_v0 = vmov 0.0  }
  0x53   : > { %s954_s27 = sshll.u32 %s229_s18, 3  ;;  %244 = vst [vmem:[#allocation2] sm:$0xff] %v784_v0  ;;  %s958_s3 = sadd.s32 16, %s492_s20 }
  0x54   : > { %s231_s28 = scalar_lea.vmem [#allocation8], %s954_s27  ;;  %p493_p2 = scmp.gt.s32.totalorder %s958_s3, 16 }
  0x55   : > { %v252_v1 = vld [vmem:[%s938_s7] sm:$0xff] (!%p493_p2)  ;;  %v253_v2 = vld [vmem:[%s938_s7 + $0x8] sm:$0xff] (!%p493_p2) }
  0x56   : > { %251 = sbr.rel (%p493_p2) target bundleno = 127 (0x7f), region = 44  ;;  %v262_v3 = vand.u32 (!%p493_p2), 2147483647, %v252_v1  ;;  %v263_v4 = vand.u32 (!%p493_p2), 2147483647, %v253_v2  ;;  %v254_v15 = vld [vmem:[%s944_s8] sm:$0xff] (!%p493_p2) }
  0x57   : > { %v255_v16 = vld [vmem:[%s944_s8 + $0x8] sm:$0xff] (!%p493_p2)  ;;  %v256_v18 = vmax.f32 (!%p493_p2), %v252_v1, 0.0  ;;  %v258_v19 = vmul.f32 (!%p493_p2), %v254_v15, %v252_v1  ;;  %v257_v22 = vmax.f32 (!%p493_p2), %v253_v2, 0.0 }
  0x58   : > { %v264_v5 = vsub.f32 (!%p493_p2), 0.0, %v262_v3  ;;  %v265_v6 = vsub.f32 (!%p493_p2), 0.0, %v263_v4  ;;  %v259_v23 = vmul.f32 (!%p493_p2), %v255_v16, %v253_v2 }
  0x59   : > { %v260_v27 = vsub.f32 (!%p493_p2), %v256_v18, %v258_v19 }
  0x5a   : > { %v266_v7 = vmul.f32 (!%p493_p2), 1.442695, %v264_v5  ;;  %v268_v8 = vmul.f32 (!%p493_p2), 1.442695, %v265_v6  ;;  %v261_v30 = vsub.f32 (!%p493_p2), %v257_v22, %v259_v23  ;;  %v290_v37 = vld [vmem:[#allocation2] sm:$0xff] (!%p493_p2) }
  0x5c   : > { %595 = vpow2.f32 (!%p493_p2), %v266_v7 }
  0x5d   : > { %597 = vpow2.f32 %v268_v8 }
  0x66   : > { %v596_v9 = vpop.eup %595 }
  0x67   : > { %v598_v10 = vpop.eup %597  ;;  %v270_v11 = vadd.f32 1.0, %v596_v9  ;;  %v273_v13 = vmul.f32 -0.5, %v596_v9  ;;  %v276_v20 = vand.u32 2147483647, %v596_v9 }
  0x68   : > { %v279_v12 = vadd.f32 1.0, %v598_v10  ;;  %v282_v14 = vmul.f32 -0.5, %v598_v10  ;;  %v285_v24 = vand.u32 2147483647, %v598_v10 }
  0x69   : > { %599 = vlog2.f32 %v270_v11  ;;  %v274_v17 = vadd.f32 1.0, %v273_v13  ;;  %vm277_vm0 = vcmp.lt.f32.partialorder %v276_v20, 0.0004427343 }
  0x6a   : > { %601 = vlog2.f32 %v279_v12  ;;  %v283_v21 = vadd.f32 1.0, %v282_v14  ;;  %vm286_vm1 = vcmp.lt.f32.partialorder %v285_v24, 0.0004427343 }
  0x6b   : > { %v275_v25 = vmul.f32 %v596_v9, %v274_v17 }
  0x6c   : > { %v284_v28 = vmul.f32 %v598_v10, %v283_v21 }
  0x73   : > { %v600_v26 = vpop.eup %599 }
  0x74   : > { %v602_v29 = vpop.eup %601  ;;  %v272_v31 = vmul.f32 0.6931472, %v600_v26 }
  0x75   : > { %v281_v32 = vmul.f32 0.6931472, %v602_v29 }
  0x76   : > { %v278_v33 = vsel %vm277_vm0, %v275_v25, %v272_v31 }
  0x77   : > { %v287_v34 = vsel %vm286_vm1, %v284_v28, %v281_v32  ;;  %v288_v35 = vadd.f32 %v278_v33, %v260_v27 }
  0x78   : > { %v289_v36 = vadd.f32 %v287_v34, %v261_v30 }
  0x7a   : > { %v291_v38 = vadd.f32 %v289_v36, %v288_v35 }
  0x7c   : > { %v292_v39 = vadd.f32 %v291_v38, %v290_v37 }
  0x7e   : > { %293 = vst [vmem:[#allocation2] sm:$0xff] %v292_v39 }
  0x7f PF: > { %p494_p8 = scmp.le.s32.totalorder %s958_s3, 16 }
  0x80   : > { %v298_v40 = vlaneseq (!%p494_p8)  ;;  %v301_v41 = vstv (!%p494_p8), %s492_s20  ;;  %v310_v45 = vld [vmem:[%s938_s7] sm:$0xff] (!%p494_p8)  ;;  %v311_v47 = vld [vmem:[%s938_s7 + $0x8] sm:$0xff] (!%p494_p8) }
  0x81   : > { %297 = sbr.rel (%p494_p8) target bundleno = 179 (0xb3), region = 48  ;;  %v314_v60 = vld [vmem:[%s944_s8] sm:$0xff] (!%p494_p8)  ;;  %v315_v61 = vld [vmem:[%s944_s8 + $0x8] sm:$0xff] (!%p494_p8) }
  0x82   : > { %v299_v42 = vshrl.u32 (!%p494_p8), %v298_v40, 7 }
  0x84   : > { %v300_v43 = vadd.s32 (!%p494_p8), 8, %v299_v42  ;;  %v302_v44 = vadd.s32 (!%p494_p8), %v301_v41, %v299_v42 }
  0x85   : > { %v354_v24 = vld [vmem:[#allocation2] sm:$0xff] (!%p494_p8) }
  0x86   : > { %v303_v46 = vadd.s32 (!%p494_p8), %v301_v41, %v300_v43  ;;  %vm304_vm2 = vcmp.lt.s32.totalorder (!%p494_p8), %v302_v44, 16 }
  0x87   : > { %v312_v48 = vsel (!%p494_p8), %vm304_vm2, %v310_v45, 0.0  ;;  %v316_v0 = vsel (!%p494_p8), %vm304_vm2, %v314_v60, 0.0 }
  0x88   : > { %vm305_vm3 = vcmp.lt.s32.totalorder %v303_v46, 16  ;;  %v324_v49 = vand.u32 2147483647, %v312_v48  ;;  %v318_v3 = vmax.f32 %v312_v48, 0.0  ;;  %v320_v4 = vmul.f32 %v316_v0, %v312_v48 }
  0x89   : > { %v313_v50 = vsel %vm305_vm3, %v311_v47, 0.0  ;;  %v317_v1 = vsel %vm305_vm3, %v315_v61, 0.0 }
  0x8a   : > { %v325_v51 = vand.u32 2147483647, %v313_v50  ;;  %v326_v52 = vsub.f32 0.0, %v324_v49  ;;  %v319_v7 = vmax.f32 %v313_v50, 0.0  ;;  %v321_v8 = vmul.f32 %v317_v1, %v313_v50 }
  0x8b   : > { %v322_v12 = vsub.f32 %v318_v3, %v320_v4 }
  0x8c   : > { %v327_v53 = vsub.f32 0.0, %v325_v51  ;;  %v328_v54 = vmul.f32 1.442695, %v326_v52  ;;  %v323_v15 = vsub.f32 %v319_v7, %v321_v8 }
  0x8e   : > { %v330_v55 = vmul.f32 1.442695, %v327_v53  ;;  %603 = vpow2.f32 %v328_v54 }
  0x90   : > { %605 = vpow2.f32 %v330_v55 }
  0x98   : > { %v604_v56 = vpop.eup %603 }
  0x99   : > { %v332_v58 = vadd.f32 1.0, %v604_v56  ;;  %v335_v62 = vmul.f32 -0.5, %v604_v56  ;;  %v338_v5 = vand.u32 2147483647, %v604_v56 }
  0x9a   : > { %v606_v57 = vpop.eup %605 }
  0x9b   : > { %v341_v59 = vadd.f32 1.0, %v606_v57  ;;  %607 = vlog2.f32 %v332_v58  ;;  %v344_v63 = vmul.f32 -0.5, %v606_v57  ;;  %v336_v2 = vadd.f32 1.0, %v335_v62 }
  0x9c   : > { %v347_v9 = vand.u32 2147483647, %v606_v57  ;;  %vm339_vm4 = vcmp.lt.f32.partialorder %v338_v5, 0.0004427343 }
  0x9d   : > { %609 = vlog2.f32 %v341_v59  ;;  %v345_v6 = vadd.f32 1.0, %v344_v63  ;;  %v337_v10 = vmul.f32 %v604_v56, %v336_v2 }
  0x9e   : > { %vm348_vm5 = vcmp.lt.f32.partialorder %v347_v9, 0.0004427343 }
  0x9f   : > { %v346_v13 = vmul.f32 %v606_v57, %v345_v6 }
  0xa5   : > { %v608_v11 = vpop.eup %607 }
  0xa6   : > { %v334_v16 = vmul.f32 0.6931472, %v608_v11 }
  0xa7   : > { %v610_v14 = vpop.eup %609 }
  0xa8   : > { %v343_v17 = vmul.f32 0.6931472, %v610_v14  ;;  %v340_v18 = vsel %vm339_vm4, %v337_v10, %v334_v16 }
  0xa9   : > { %v350_v20 = vadd.f32 %v340_v18, %v322_v12 }
  0xaa   : > { %v349_v19 = vsel %vm348_vm5, %v346_v13, %v343_v17 }
  0xab   : > { %v351_v21 = vadd.f32 %v349_v19, %v323_v15  ;;  %v352_v22 = vsel %vm304_vm2, %v350_v20, 0.0 }
  0xad   : > { %v353_v23 = vsel %vm305_vm3, %v351_v21, 0.0 }
  0xae   : > { %v355_v25 = vadd.f32 %v353_v23, %v352_v22 }
  0xb0   : > { %v356_v26 = vadd.f32 %v355_v25, %v354_v24 }
  0xb2   : > { %357 = vst [vmem:[#allocation2] sm:$0xff] %v356_v26 }
  0xb3 PF: > { %s496_s21 = sshll.u32 %s770_s14, 7  ;;  %s377_s23 = sshll.u32 %s231_s28, 4  ;;  %s378_s23 = int_to_ptr.vmem [resolvable:$true] %s377_s23 }
  0xb4   : > { %s985_s22 = scalar_lea.hbm %s1038_s2, %s496_s21  ;;  %s364_s30 = scalar_lea.sflag [#allocation5], %s229_s18 }
  0xb5   : > { %s671_s4 = scalar_lea.vmem %s378_s23, 128  ;;  %p1049_p10 = scmp.ne.s32.totalorder %s1043_s25, 0 }
  0xb6   : > { %p672_p9 = scmp.ne.s32.totalorder %s378_s23, %s671_s4  ;;  %s785_s5 = smov [#allocation8]  }
  0xb7   : > { %s675_s6 = sshll.u32 %s785_s5, 4  ;;  %s676_s6 = int_to_ptr.vmem [resolvable:$false] %s675_s6 }
  0xb8   : > { %p673_p11 = pnand %p672_p9, %p1049_p10  ;;  %s677_s14 = scalar_lea.vmem %s676_s6, 256 }
  0xb9   : > { %v361_v27 = vld [vmem:[#allocation2] sm:$0xff]  ;;  %p678_p3 = scmp.lt.s32.totalorder %s378_s23, %s676_s6  ;;  %p679_p7 = scmp.lt.s32.totalorder %s677_s14, %s671_s4 }
  0xba   : > { %362 = vst [vmem:[%s231_s28] sm:$0xff] %v361_v27  ;;  %p674_p1 = pneg %p673_p11 }
  0xbb   : > { %p680_p13 = por %p679_p7, %p678_p3 }
  0xbd   : > { %p681_p4 = pnand %p680_p13, %p674_p1 }
  0xbf   : > { %684 = shalt.err (!%p681_p4)
}
  0xc0   : > { %s685_s7 = scalar_lea.hbm %s985_s22, 128  ;;  %s689_s18 = scalar_lea.hbm %s1038_s2, 256 }
  0xc1   : > { %p686_p6 = scmp.ne.s32.totalorder %s985_s22, %s685_s7  ;;  %p690_p5 = scmp.lt.u32.totalorder %s985_s22, %s1038_s2 }
  0xc2   : > { %p691_p2 = scmp.lt.u32.totalorder %s689_s18, %s685_s7  ;;  %p693_p9 = scmp.lt.u32.totalorder %s685_s7, %s985_s22 }
  0xc3   : > { %p687_p12 = pnand %p686_p6, %p1049_p10 }
  0xc4   : > { %p692_p8 = por %p691_p2, %p690_p5 }
  0xc5   : > { %p688_p0 = pneg %p687_p12 }
  0xc6   : > { %p694_p11 = por %p693_p9, %p692_p8 }
  0xc8   : > { %p695_p1 = pnand %p694_p11, %p688_p0 }
  0xca   : > { %698 = shalt.err (!%p695_p1)
}
  0xcb   : > { %505 = dma.vmem_to_hbm [thread:$0]  (%p1049_p10), %s378_s23, 128, %s985_s22, %s364_s30  }
  0xcc PF: > { %s389_s3 = sand.u32 1, %s750_s9   ;;  %p1050_p3 = scmp.ne.s32.totalorder %s1044_s26, 0 }
  0xcd   : > { %p1051_p7 = scmp.ge.s32.totalorder %s778_s16, 2  ;;  %s390_s28 = scalar_lea.sflag [#allocation5], %s389_s3 }
  0xcf   : > { %p515_p13 = pnand %p1051_p7, %p1050_p3 }
  0xd1   : > { %744 = dma.done.wait (!%p515_p13), %s390_s28, 128  }
  0xd2   : > { %746 = vsyncadd (!%p515_p13), %s390_s28, 4294967168  ;;  %s21_s16 = sadd.s32 1, %s778_s16   ;;  %s1052_s9 = smov %s754_s10 }
  0xd3   : > { %p18_p4 = scmp.ge.s32.totalorder %s21_s16, 4   ;;  %s1053_s10 = smov %s758_s11 }
  0xd4   : > { %s1054_s11 = smov %s859_s24  ;;  %s1055_s12 = smov %s766_s13 }
  0xd5   : > { %s1026_s13 = smov 0   ;;  %s1056_s14 = smov %s774_s15 }
  0xd6   : > { %s1057_s15 = smov %s1059_s19  ;;  %20 = sbr.rel (!%p18_p4) target bundleno = 9 (0x9), region = 102 }
  0xdd   :  { %395 = vsyncpa [#allocation4], 1 }
  0xde   :  { %397 = vsyncpa [#allocation4 + $0x1], 1 }
  0xdf   :  { %398 = vsyncpa [#allocation7], 1 }
  0xe0   :  { %400 = vsyncpa [#allocation7 + $0x1], 1 }
  0xe1   :  { %401 = vsyncpa [#allocation5], 1 }
  0xe2   :  { %403 = vsyncpa [#allocation5 + $0x1], 1 }

</bundles_post_ra>
